<compile_context>
chip_gen: v6e
topology: v6e:2x2x1
jax: 0.10.0
libtpu: 0.0.40
codegen_flags: <defaults>
</compile_context>

<pallas_src>
import jax
import jax.numpy as jnp
from jax import lax
from jax.experimental import pallas as pl
from jax.experimental.pallas import tpu as pltpu

OUT_W = 8           # sublane rows of the fused head: [p0, p1, value, 5x pad]
MAX_BLOCK_B = 4096  # max batch-lanes per grid step (x tile = 256 KiB f32)
LANE = 128


def _leaky_relu(x, negative_slope=0.01):
    # F.leaky_relu default negative_slope = 0.01
    return jnp.where(x > 0, x, negative_slope * x)


def _round_up(v, m):
    return -(-v // m) * m


def policy_kernel(xT_ref, w1_ref, b1_ref, w2_ref, b2_ref, wh_ref, bh_ref, out_ref):
    # Transposed layout: activations are (features, batch_lanes).
    xT = xT_ref[...]                                               # (n_obs, Bt)

    # lin1 + leaky_relu
    h1 = jnp.dot(w1_ref[...], xT, preferred_element_type=jnp.float32) + b1_ref[...]
    h1 = _leaky_relu(h1)                                           # (layer1, Bt)

    # lin2 + leaky_relu
    h2 = jnp.dot(w2_ref[...], h1, preferred_element_type=jnp.float32) + b2_ref[...]
    h2 = _leaky_relu(h2)                                           # (layer2, Bt)

    # fused action + value head: rows = [logit0, logit1, value, 0 x 5]
    head = jnp.dot(wh_ref[...], h2, preferred_element_type=jnp.float32) + bh_ref[...]

    # 2-class softmax in sigmoid form (no cross-lane reductions).
    l0 = head[0:1, :]
    l1 = head[1:2, :]
    # NOTE: pl.reciprocal(..., approx=True) would push this onto the (idle) EUP
    # slot but its relative error breaks the 1e-5 reference tolerance.
    p0 = pl.reciprocal(1.0 + jnp.exp(l1 - l0), approx=False)
    p1 = 1.0 - p0

    # Assemble [p0; p1; value; 0...] with sublane-iota selects (pure VPU).
    row = lax.broadcasted_iota(jnp.int32, head.shape, 0)
    out = jnp.where(row == 0, p0,
          jnp.where(row == 1, p1,
          jnp.where(row == 2, head, 0.0)))
    out_ref[...] = out                                             # (OUT_W, Bt)


def _choose_block_b(B):
    """Lane-tile size: multiple of 128, <= MAX_BLOCK_B, and (when possible)
    small enough that the grid has >= 2 steps so both v7x TensorCores get work."""
    if B <= LANE:
        return LANE
    half = _round_up(-(-B // 2), LANE)        # round_up(cdiv(B, 2), 128)
    return min(MAX_BLOCK_B, half)


def policy_forward(x, params, block_b=None):
    """x: (B, n_obs) float32.

    params: PyTorch-layout weights
        w1 (layer1, n_obs), b1 (layer1, 1),
        w2 (layer2, layer1), b2 (layer2, 1),
        wh (OUT_W, layer2), bh (OUT_W, 1)   (packed head, built in init_params)

    Returns (action_prob (B, 2), state_values (B, 1)).
    """
    B, n_obs = x.shape
    layer1 = params["w1"].shape[0]
    layer2 = params["w2"].shape[0]

    if block_b is None:
        block_b = _choose_block_b(B)
    block_b = _round_up(block_b, LANE)

    # Pad the batch up to a multiple of the tile (never one giant tile).
    B_pad = _round_up(B, block_b)
    xT = x.T                                                       # (n_obs, B)
    if B_pad != B:
        xT = jnp.pad(xT, ((0, 0), (0, B_pad - B)))

    grid = (B_pad // block_b,)
    resident = lambda i: (0, 0)   # weights/biases stay resident across tiles

    out = pl.pallas_call(
        policy_kernel,
        out_shape=jax.ShapeDtypeStruct((OUT_W, B_pad), jnp.float32),
        grid=grid,
        in_specs=[
            pl.BlockSpec((n_obs, block_b), lambda i: (0, i)),      # xT tile streams
            pl.BlockSpec((layer1, n_obs), resident),               # w1
            pl.BlockSpec((layer1, 1), resident),                   # b1
            pl.BlockSpec((layer2, layer1), resident),              # w2
            pl.BlockSpec((layer2, 1), resident),                   # b2
            pl.BlockSpec((OUT_W, layer2), resident),               # fused head W
            pl.BlockSpec((OUT_W, 1), resident),                    # fused head b
        ],
        out_specs=pl.BlockSpec((OUT_W, block_b), lambda i: (0, i)),
        compiler_params=pltpu.CompilerParams(
            dimension_semantics=("parallel",)),
    )(xT, params["w1"], params["b1"], params["w2"], params["b2"],
      params["wh"], params["bh"])

    # Wrapper-side slice/transpose: layout plumbing only.
    y = out[:3, :B].T                                              # (B, 3)
    action_prob = y[:, 0:2]
    state_values = y[:, 2:3]
    return action_prob, state_values


def init_params(key, n_observations, layer1=32, layer2=16):
    """Deterministic synthetic parameters in PyTorch (out, in) layout."""
    ks = jax.random.split(key, 8)

    def lin(kw, kb, fan_in, fan_out):
        # PyTorch Linear-style uniform(-1/sqrt(fan_in), 1/sqrt(fan_in))
        bound = 1.0 / jnp.sqrt(jnp.float32(fan_in))
        w = jax.random.uniform(kw, (fan_out, fan_in), jnp.float32, -bound, bound)
        b = jax.random.uniform(kb, (fan_out, 1), jnp.float32, -bound, bound)
        return w, b

    w1, b1 = lin(ks[0], ks[1], n_observations, layer1)
    w2, b2 = lin(ks[2], ks[3], layer1, layer2)
    wa, ba = lin(ks[4], ks[5], layer2, 2)   # action_head -> 2 logits
    wv, bv = lin(ks[6], ks[7], layer2, 1)   # value_head -> 1 value

    # Pack the two heads ONCE: (OUT_W, layer2) weight / (OUT_W, 1) bias.
    wh = jnp.concatenate([wa, wv, jnp.zeros((OUT_W - 3, layer2), jnp.float32)], axis=0)
    bh = jnp.concatenate([ba, bv, jnp.zeros((OUT_W - 3, 1), jnp.float32)], axis=0)

    return {"w1": w1, "b1": b1, "w2": w2, "b2": b2,
            "wa": wa, "ba": ba, "wv": wv, "bv": bv,
            "wh": wh, "bh": bh}


def reference_forward(x, p):
    h1 = _leaky_relu(x @ p["w1"].T + p["b1"].T)
    h2 = _leaky_relu(h1 @ p["w2"].T + p["b2"].T)
    probs = jax.nn.softmax(h2 @ p["wa"].T + p["ba"].T, axis=-1)
    vals = h2 @ p["wv"].T + p["bv"].T
    return probs, vals


if __name__ == "__main__":
    key = jax.random.PRNGKey(0)
    k_x, k_x2, k_p = jax.random.split(key, 3)

    n_obs = 16
    params = init_params(k_p, n_obs, layer1=32, layer2=16)

    # Small latency-style batch (single 128-lane tile after padding).
    B = 8
    x = jax.random.normal(k_x, (B, n_obs), dtype=jnp.float32)
    action_prob, state_values = policy_forward(x, params)
    jax.block_until_ready((action_prob, state_values))

    ref_prob, ref_val = reference_forward(x, params)
    assert action_prob.shape == (B, 2) and state_values.shape == (B, 1)
    assert jnp.allclose(action_prob, ref_prob, atol=1e-5, rtol=1e-5)
    assert jnp.allclose(state_values, ref_val, atol=1e-5, rtol=1e-5)
    assert jnp.allclose(jnp.sum(action_prob, axis=-1), 1.0, atol=1e-5)

    # Non-multiple batch: exercises the padding path + multi-step parallel grid.
    B2 = 200
    x2 = jax.random.normal(k_x2, (B2, n_obs), dtype=jnp.float32)
    p2, v2 = policy_forward(x2, params)
    jax.block_until_ready((p2, v2))
    rp2, rv2 = reference_forward(x2, params)
    assert p2.shape == (B2, 2) and v2.shape == (B2, 1)
    assert jnp.allclose(p2, rp2, atol=1e-5, rtol=1e-5)
    assert jnp.allclose(v2, rv2, atol=1e-5, rtol=1e-5)

    print("KERNEL_OK")
</pallas_src>

<mosaic_0001>
module attributes {stable_mosaic.version = 11 : i64} {
  func.func @policy_kernel(%arg0: i32, %arg1: memref<16x128xf32, #tpu.memory_space<vmem>>, %arg2: memref<32x16xf32, #tpu.memory_space<vmem>>, %arg3: memref<32x1xf32, #tpu.memory_space<vmem>>, %arg4: memref<16x32xf32, #tpu.memory_space<vmem>>, %arg5: memref<16x1xf32, #tpu.memory_space<vmem>>, %arg6: memref<8x16xf32, #tpu.memory_space<vmem>>, %arg7: memref<8x1xf32, #tpu.memory_space<vmem>>, %arg8: memref<8x128xf32, #tpu.memory_space<vmem>>) attributes {dimension_semantics = [#tpu.dimension_semantics<parallel>], iteration_bounds = array<i64: 1>, scalar_prefetch = 0 : i64, scratch_operands = 0 : i64, tpu.core_type = #tpu.core_type<tc>, window_params = [{transform_indices = @transform_0, window_bounds = array<i64: 16, 128>}, {pipeline_mode = #tpu.pipeline_mode<synchronous>, transform_indices = @transform_1, window_bounds = array<i64: 32, 16>}, {pipeline_mode = #tpu.pipeline_mode<synchronous>, transform_indices = @transform_2, window_bounds = array<i64: 32, 1>}, {pipeline_mode = #tpu.pipeline_mode<synchronous>, transform_indices = @transform_3, window_bounds = array<i64: 16, 32>}, {pipeline_mode = #tpu.pipeline_mode<synchronous>, transform_indices = @transform_4, window_bounds = array<i64: 16, 1>}, {pipeline_mode = #tpu.pipeline_mode<synchronous>, transform_indices = @transform_5, window_bounds = array<i64: 8, 16>}, {pipeline_mode = #tpu.pipeline_mode<synchronous>, transform_indices = @transform_6, window_bounds = array<i64: 8, 1>}, {transform_indices = @transform_7, window_bounds = array<i64: 8, 128>}]} {
    %c0 = arith.constant 0 : index
    %c0_0 = arith.constant 0 : index
    %0 = vector.load %arg1[%c0, %c0_0] : memref<16x128xf32, #tpu.memory_space<vmem>>, vector<16x128xf32>
    %c0_1 = arith.constant 0 : index
    %c0_2 = arith.constant 0 : index
    %1 = vector.load %arg2[%c0_1, %c0_2] : memref<32x16xf32, #tpu.memory_space<vmem>>, vector<32x16xf32>
    %cst = arith.constant dense<0.000000e+00> : vector<32x128xf32>
    %2 = tpu.matmul %1, %0, %cst {dimension_numbers = #tpu.dot_dimension_numbers<[1], [0], [0], [1], [0, 0, 1, 1], [], []>} : vector<32x16xf32>, vector<16x128xf32>, vector<32x128xf32> -> vector<32x128xf32>
    %c0_3 = arith.constant 0 : index
    %c0_4 = arith.constant 0 : index
    %3 = vector.load %arg3[%c0_3, %c0_4] : memref<32x1xf32, #tpu.memory_space<vmem>>, vector<32x1xf32>
    %4 = vector.broadcast %3 : vector<32x1xf32> to vector<32x128xf32>
    %5 = arith.addf %2, %4 : vector<32x128xf32>
    %cst_5 = arith.constant 0.000000e+00 : f32
    %6 = vector.broadcast %cst_5 : f32 to vector<32x128xf32>
    %7 = arith.cmpf ogt, %5, %6 : vector<32x128xf32>
    %cst_6 = arith.constant 0.00999999977 : f32
    %8 = vector.broadcast %cst_6 : f32 to vector<32x128xf32>
    %9 = arith.mulf %8, %5 : vector<32x128xf32>
    %10 = arith.select %7, %5, %9 : vector<32x128xi1>, vector<32x128xf32>
    %c0_7 = arith.constant 0 : index
    %c0_8 = arith.constant 0 : index
    %11 = vector.load %arg4[%c0_7, %c0_8] : memref<16x32xf32, #tpu.memory_space<vmem>>, vector<16x32xf32>
    %cst_9 = arith.constant dense<0.000000e+00> : vector<16x128xf32>
    %12 = tpu.matmul %11, %10, %cst_9 {dimension_numbers = #tpu.dot_dimension_numbers<[1], [0], [0], [1], [0, 0, 1, 1], [], []>} : vector<16x32xf32>, vector<32x128xf32>, vector<16x128xf32> -> vector<16x128xf32>
    %c0_10 = arith.constant 0 : index
    %c0_11 = arith.constant 0 : index
    %13 = vector.load %arg5[%c0_10, %c0_11] : memref<16x1xf32, #tpu.memory_space<vmem>>, vector<16x1xf32>
    %14 = vector.broadcast %13 : vector<16x1xf32> to vector<16x128xf32>
    %15 = arith.addf %12, %14 : vector<16x128xf32>
    %cst_12 = arith.constant 0.000000e+00 : f32
    %16 = vector.broadcast %cst_12 : f32 to vector<16x128xf32>
    %17 = arith.cmpf ogt, %15, %16 : vector<16x128xf32>
    %cst_13 = arith.constant 0.00999999977 : f32
    %18 = vector.broadcast %cst_13 : f32 to vector<16x128xf32>
    %19 = arith.mulf %18, %15 : vector<16x128xf32>
    %20 = arith.select %17, %15, %19 : vector<16x128xi1>, vector<16x128xf32>
    %c0_14 = arith.constant 0 : index
    %c0_15 = arith.constant 0 : index
    %21 = vector.load %arg6[%c0_14, %c0_15] : memref<8x16xf32, #tpu.memory_space<vmem>>, vector<8x16xf32>
    %cst_16 = arith.constant dense<0.000000e+00> : vector<8x128xf32>
    %22 = tpu.matmul %21, %20, %cst_16 {dimension_numbers = #tpu.dot_dimension_numbers<[1], [0], [0], [1], [0, 0, 1, 1], [], []>} : vector<8x16xf32>, vector<16x128xf32>, vector<8x128xf32> -> vector<8x128xf32>
    %c0_17 = arith.constant 0 : index
    %c0_18 = arith.constant 0 : index
    %23 = vector.load %arg7[%c0_17, %c0_18] : memref<8x1xf32, #tpu.memory_space<vmem>>, vector<8x1xf32>
    %24 = vector.broadcast %23 : vector<8x1xf32> to vector<8x128xf32>
    %25 = arith.addf %22, %24 : vector<8x128xf32>
    %26 = vector.extract_strided_slice %25 {offsets = [0, 0], sizes = [1, 128], strides = [1, 1]} : vector<8x128xf32> to vector<1x128xf32>
    %27 = vector.extract_strided_slice %25 {offsets = [1, 0], sizes = [1, 128], strides = [1, 1]} : vector<8x128xf32> to vector<1x128xf32>
    %28 = arith.subf %27, %26 : vector<1x128xf32>
    %29 = math.exp %28 : vector<1x128xf32>
    %cst_19 = arith.constant 1.000000e+00 : f32
    %30 = vector.broadcast %cst_19 : f32 to vector<1x128xf32>
    %31 = arith.addf %30, %29 : vector<1x128xf32>
    %32 = tpu.reciprocal %31 : vector<1x128xf32> -> vector<1x128xf32>
    %cst_20 = arith.constant 1.000000e+00 : f32
    %33 = vector.broadcast %cst_20 : f32 to vector<1x128xf32>
    %34 = arith.subf %33, %32 : vector<1x128xf32>
    %35 = tpu.iota {dimensions = array<i32: 0>} : vector<8x128xi32>
    %c0_i32 = arith.constant 0 : i32
    %36 = vector.broadcast %c0_i32 : i32 to vector<8x128xi32>
    %37 = arith.cmpi eq, %35, %36 : vector<8x128xi32>
    %c1_i32 = arith.constant 1 : i32
    %38 = vector.broadcast %c1_i32 : i32 to vector<8x128xi32>
    %39 = arith.cmpi eq, %35, %38 : vector<8x128xi32>
    %c2_i32 = arith.constant 2 : i32
    %40 = vector.broadcast %c2_i32 : i32 to vector<8x128xi32>
    %41 = arith.cmpi eq, %35, %40 : vector<8x128xi32>
    %cst_21 = arith.constant 0.000000e+00 : f32
    %42 = vector.broadcast %cst_21 : f32 to vector<8x128xf32>
    %43 = arith.select %41, %25, %42 : vector<8x128xi1>, vector<8x128xf32>
    %44 = vector.shape_cast %34 : vector<1x128xf32> to vector<1x128xf32>
    %45 = vector.broadcast %44 : vector<1x128xf32> to vector<8x128xf32>
    %46 = arith.select %39, %45, %43 : vector<8x128xi1>, vector<8x128xf32>
    %47 = vector.shape_cast %32 : vector<1x128xf32> to vector<1x128xf32>
    %48 = vector.broadcast %47 : vector<1x128xf32> to vector<8x128xf32>
    %49 = arith.select %37, %48, %46 : vector<8x128xi1>, vector<8x128xf32>
    %c0_22 = arith.constant 0 : index
    %c0_23 = arith.constant 0 : index
    %50 = vector.load %arg8[%c0_22, %c0_23] : memref<8x128xf32, #tpu.memory_space<vmem>>, vector<8x128xf32>
    tpu.vector_store %arg8[%c0_22, %c0_23], %49 {strides = array<i32>} : memref<8x128xf32, #tpu.memory_space<vmem>>, vector<8x128xf32>,
    return
  }
  func.func @transform_0(%arg0: i32) -> (i32, i32) {
    %c0_i32 = arith.constant 0 : i32
    %c0_i32_0 = arith.constant 0 : i32
    return %c0_i32, %arg0 : i32, i32
  }
  func.func @transform_1(%arg0: i32) -> (i32, i32) {
    %c0_i32 = arith.constant 0 : i32
    %c0_i32_0 = arith.constant 0 : i32
    %c0_i32_1 = arith.constant 0 : i32
    return %c0_i32, %c0_i32_0 : i32, i32
  }
  func.func @transform_2(%arg0: i32) -> (i32, i32) {
    %c0_i32 = arith.constant 0 : i32
    %c0_i32_0 = arith.constant 0 : i32
    %c0_i32_1 = arith.constant 0 : i32
    return %c0_i32, %c0_i32_0 : i32, i32
  }
  func.func @transform_3(%arg0: i32) -> (i32, i32) {
    %c0_i32 = arith.constant 0 : i32
    %c0_i32_0 = arith.constant 0 : i32
    %c0_i32_1 = arith.constant 0 : i32
    return %c0_i32, %c0_i32_0 : i32, i32
  }
  func.func @transform_4(%arg0: i32) -> (i32, i32) {
    %c0_i32 = arith.constant 0 : i32
    %c0_i32_0 = arith.constant 0 : i32
    %c0_i32_1 = arith.constant 0 : i32
    return %c0_i32, %c0_i32_0 : i32, i32
  }
  func.func @transform_5(%arg0: i32) -> (i32, i32) {
    %c0_i32 = arith.constant 0 : i32
    %c0_i32_0 = arith.constant 0 : i32
    %c0_i32_1 = arith.constant 0 : i32
    return %c0_i32, %c0_i32_0 : i32, i32
  }
  func.func @transform_6(%arg0: i32) -> (i32, i32) {
    %c0_i32 = arith.constant 0 : i32
    %c0_i32_0 = arith.constant 0 : i32
    %c0_i32_1 = arith.constant 0 : i32
    return %c0_i32, %c0_i32_0 : i32, i32
  }
  func.func @transform_7(%arg0: i32) -> (i32, i32) {
    %c0_i32 = arith.constant 0 : i32
    %c0_i32_0 = arith.constant 0 : i32
    return %c0_i32, %arg0 : i32, i32
  }
}

</mosaic_0001>

<bundles_post_ra>
// kernel: tpu_custom_call.1
= control target key start
LH: loop header
LB: loop body
LE: loop exit
PB: predicated region body
PF: predicated region fallthrough
CT: control target
= control target key end

     0   :  { %vm57_vm0 = vcmask 130048   ;;  %v471_v4 = vmov 0   ;;  %s573_s0 = inlined_call_operand.vmem [shape: f32[16,128], index: 0, kind: input, shape index: {}]   ;;  %s574_s1 = inlined_call_operand.vmem [shape: f32[32,16], index: 1, kind: input, shape index: {}]   ;;  %s575_s2 = inlined_call_operand.vmem [shape: f32[32,1], index: 2, kind: input, shape index: {}]   ;;  %s576_s3 = inlined_call_operand.vmem [shape: f32[16,32], index: 3, kind: input, shape index: {}]   ;;  %s577_s4 = inlined_call_operand.vmem [shape: f32[16,1], index: 4, kind: input, shape index: {}]   ;;  %s578_s5 = inlined_call_operand.vmem [shape: f32[8,16], index: 5, kind: input, shape index: {}]   ;;  %s579_s6 = inlined_call_operand.vmem [shape: f32[8,1], index: 6, kind: input, shape index: {}]   ;;  %s580_s7 = inlined_call_operand.hbm [shape: f32[8,128], index: 7, kind: output, shape index: {}]  }
   0x1   :  { %v28_v0 = vld [vmem:[%s573_s0 + $0x8] sm:$0xff]  ;;  %v27_v1 = vld [vmem:[%s573_s0] sm:$0xff]  ;;  %443 = vset.pattern.permute.xlu0 %v471_v4  ;;  %v36_v5 = vld [vmem:[%s575_s2 + $0x18] sm:$0xff]  ;;  %444 = vset.pattern.permute.xlu1 %v471_v4 }
   0x2   :  { %v29_v2 = vld [vmem:[%s574_s1] sm:$0xff]  ;;  %411 = vmatprep.subr.mxu0 %v28_v0  ;;  %v30_v3 = vld [vmem:[%s574_s1 + $0x8] sm:$0xff]  ;;  %v31_v6 = vld [vmem:[%s574_s1 + $0x10] sm:$0xff]  ;;  %54 = vperm.xlu0 %443, %v36_v5  }
   0x3   :  { %415 = vmatprep.mubr.msk.f32.mxu0 %vm57_vm0, %v29_v2  ;;  %412 = vmatpush3.msra.mxu0 %v28_v0  ;;  %v34_v7 = vld [vmem:[%s575_s2 + $0x8] sm:$0xff]  ;;  %v35_v8 = vld [vmem:[%s575_s2 + $0x10] sm:$0xff] }
   0x4   :  { %413 = vmatprep.subr.mxu0 %v27_v1 }
   0x5   :  { %414 = vmatpush3.msra.mxu0 %v27_v1 }
   0x6   :  { %12 = vsyncpa [#allocation3], 0  ;;  %416 = vmatmul.mubr.msk.f32.vlgmr.msra.gmra.mxu0 %vm57_vm0, %v30_v3  ;;  %44 = vperm.xlu1 %444, %v34_v7   ;;  %v32_v9 = vld [vmem:[%s574_s1 + $0x18] sm:$0xff]  ;;  %v33_v10 = vld [vmem:[%s575_s2] sm:$0xff]  ;;  %vm181_vm1 = vcmask 261120   ;;  %v472_v36 = vmov 0.0   ;;  %v358_v57 = vlaneseq }
   0x7   :  { %418 = vmatprep.mubr.msk.f32.mxu0 %vm57_vm0, %v31_v6  ;;  %49 = vperm.xlu0 %443, %v35_v8   ;;  %v170_v11 = vld [vmem:[%s577_s4 + $0x8] sm:$0xff]  ;;  %v169_v12 = vld [vmem:[%s577_s4] sm:$0xff]  ;;  %vm473_vm6 = vmmov 0  }
   0x8   :  { %v270_v13 = vld [vmem:[%s579_s6] sm:$0xff]  ;;  %v168_v35 = vld [vmem:[%s576_s3 + $0x8] sm:$0xff]  ;;  %432 = vmatprep.subr.mxu0 %v472_v36  ;;  %v359_v58 = vshrl.u32 %v358_v57, 7 }
   0x9   :  { %v167_v14 = vld [vmem:[%s576_s3] sm:$0xff] }
   0xa   :  { %419 = vmatmul.mubr.msk.f32.gmra.mxu0 %vm57_vm0, %v32_v9  ;;  %39 = vperm.xlu1 %444, %v33_v10   ;;  %v269_v46 = vld [vmem:[%s578_s5] sm:$0xff]  ;;  %v366_v60 = vsub.s32 1, %v359_v58  ;;  %vm362_vm9 = vcmp.eq.s32.totalorder %v359_v58, 2  ;;  %vm361_vm10 = vcmp.eq.s32.totalorder %v359_v58, 1  ;;  %s474_s5 = smov [#allocation2]   ;;  %vm360_vm11 = vcmp.eq.s32.totalorder %v359_v58, 0 }
   0xb   :  { %178 = vperm.xlu0 %443, %v170_v11   ;;  %429 = vmatprep.mubr.msk.f32.mxu1 %vm181_vm1, %v167_v14  ;;  %s381_s27 = sshll.u32 %s474_s5, 4  ;;  %s382_s27 = int_to_ptr.vmem [resolvable:$true] %s381_s27 }
   0xc   :  { %436 = vmatprep.mubr.msk.f32.mxu0 %vm473_vm6, %v472_v36  ;;  %s449_s28 = scalar_lea.vmem %s382_s27, 128  ;;  %p454_p1 = scmp.lt.s32.totalorder %s382_s27, %s382_s27 }
   0xd   :  { %p450_p0 = scmp.ne.s32.totalorder %s382_s27, %s449_s28  ;;  %p455_p2 = scmp.lt.s32.totalorder %s449_s28, %s449_s28 }
   0xe   :  { %173 = vperm.xlu1 %444, %v169_v12  }
   0xf   :  { %273 = vperm.xlu0 %443, %v270_v13   ;;  %p456_p3 = por %p455_p2, %p454_p1 }
  0x11   :  { %p457_p4 = pnand %p456_p3, %p450_p0 }
  0x7d   :  { %v55_v16 = vpop.permute.xlu0 %54 }
  0x81   :  { %v45_v15 = vpop.permute.xlu1 %44 }
  0x82   :  { %v50_v23 = vpop.permute.xlu0 %49 }
  0x85   :  { %v40_v19 = vpop.permute.xlu1 %39 }
  0x86   :  { %v179_v37 = vpop.permute.xlu0 %178 }
  0x89   :  { %v174_v40 = vpop.permute.xlu1 %173 }
  0x8a   :  { %v274_v48 = vpop.permute.xlu0 %273 }
  0xc6   :  { %v417_v17 = vpop.f32.mrf.mxu0 }
  0xc7   :  { %v142_v21 = vadd.f32 %v417_v17, %v45_v15 }
  0xc8   :  { %v136_v18 = vpop.f32.mrf.mxu0 }
  0xc9   :  { %v137_v25 = vadd.f32 %v136_v18, %v40_v19  ;;  %v160_v28 = vmul.f32 0.01, %v142_v21  ;;  %vm156_vm4 = vcmp.gt.f32.partialorder %v142_v21, 0.0 }
  0xca   :  { %v420_v20 = vpop.f32.mrf.mxu0 }
  0xcb   :  { %v152_v22 = vadd.f32 %v420_v20, %v55_v16  ;;  %v159_v31 = vmul.f32 0.01, %v137_v25  ;;  %vm155_vm5 = vcmp.gt.f32.partialorder %v137_v25, 0.0  ;;  %v164_v33 = vsel %vm156_vm4, %v142_v21, %v160_v28 }
  0xcc   :  { %v146_v24 = vpop.f32.mrf.mxu0 }
  0xcd   :  { %v147_v26 = vadd.f32 %v146_v24, %v50_v23  ;;  %vm158_vm2 = vcmp.gt.f32.partialorder %v152_v22, 0.0  ;;  %v162_v27 = vmul.f32 0.01, %v152_v22  ;;  %v163_v34 = vsel %vm155_vm5, %v137_v25, %v159_v31 }
  0xcf   :  { %v161_v29 = vmul.f32 0.01, %v147_v26  ;;  %v166_v30 = vsel %vm158_vm2, %v152_v22, %v162_v27  ;;  %vm157_vm3 = vcmp.gt.f32.partialorder %v147_v26, 0.0 }
  0xd0   :  { %421 = vmatprep.subr.mxu1 %v166_v30 }
  0xd1   :  { %422 = vmatpush3.msra.mxu1 %v166_v30  ;;  %v165_v32 = vsel %vm157_vm3, %v147_v26, %v161_v29 }
  0xd2   :  { %423 = vmatprep.subr.mxu1 %v165_v32 }
  0xd3   :  { %424 = vmatpush3.msra.mxu1 %v165_v32 }
  0xd4   :  { %425 = vmatprep.subr.mxu1 %v164_v33 }
  0xd5   :  { %426 = vmatpush3.msra.mxu1 %v164_v33 }
  0xd6   :  { %427 = vmatprep.subr.mxu1 %v163_v34 }
  0xd7   :  { %428 = vmatpush3.msra.mxu1 %v163_v34 }
  0xd8   :  { %430 = vmatmul.mubr.msk.f32.vlgmr.msra.gmra.mxu1 %vm181_vm1, %v168_v35 }
 0x198   :  { %v431_v38 = vpop.f32.mrf.mxu1 }
 0x199   :  { %v260_v39 = vadd.f32 %v431_v38, %v179_v37 }
 0x19a   :  { %v254_v41 = vpop.f32.mrf.mxu1 }
 0x19b   :  { %vm264_vm7 = vcmp.gt.f32.partialorder %v260_v39, 0.0  ;;  %v266_v42 = vmul.f32 0.01, %v260_v39  ;;  %v255_v43 = vadd.f32 %v254_v41, %v174_v40 }
 0x19d   :  { %vm263_vm8 = vcmp.gt.f32.partialorder %v255_v43, 0.0  ;;  %v265_v44 = vmul.f32 0.01, %v255_v43  ;;  %v268_v45 = vsel %vm264_vm7, %v260_v39, %v266_v42 }
 0x19e   :  { %433 = vmatpush3.msra.mxu0 %v268_v45 }
 0x19f   :  { %434 = vmatprep.subr.mxu0 %v472_v36  ;;  %v267_v47 = vsel %vm263_vm8, %v255_v43, %v265_v44 }
 0x1a0   :  { %435 = vmatpush3.msra.mxu0 %v267_v47 }
 0x1a1   :  { %437 = vmatmul.mubr.msk.f32.vlgmr.msra.gmra.mxu0 %vm57_vm0, %v269_v46 }
 0x261   :  { %v345_v49 = vpop.f32.mrf.mxu0 }
 0x262   :  { %v346_v50 = vadd.f32 %v345_v49, %v274_v48 }
 0x263   :  { %v438_v51 = vpop.f32.mrf.mxu0 }
 0x264   :  { %v350_v52 = vrot.slane %v346_v50, 7  ;;  %v363_v63 = vsel %vm362_vm9, %v346_v50, 0.0 }
 0x266   :  { %v352_v53 = vsub.f32 %v346_v50, %v350_v52 }
 0x268   :  { %v353_v54 = vmul.f32 1.442695, %v352_v53 }
 0x26a   :  { %445 = vpow2.f32 %v353_v54 }
 0x277   :  { %v446_v55 = vpop.eup %445 }
 0x278   :  { %v355_v56 = vadd.f32 1.0, %v446_v55 }
 0x27a   :  { %447 = vrcp.f32 %v355_v56 }
 0x287   :  { %v448_v59 = vpop.eup %447 }
 0x288   :  { %v357_v61 = vsub.f32 1.0, %v448_v59  ;;  %v372_v0 = vrot.slane %v448_v59, %v366_v60 }
 0x28a   :  { %v367_v62 = vrot.slane %v357_v61, %v366_v60 }
 0x28c   :  { %v368_v1 = vsel %vm361_vm10, %v367_v62, %v363_v63 }
 0x28d   :  { %v373_v2 = vsel %vm360_vm11, %v372_v0, %v368_v1 }
 0x28e   :  { %374 = vst [vmem:[#allocation2] sm:$0xff] %v373_v2 }
 0x28f   :  { %460 = shalt.err (!%p457_p4)
}
 0x290   :  { %384 = dma.vmem_to_hbm [thread:$0]  %s382_s27, 128, %s580_s7, [#allocation3]  }
 0x291   :  { %469 = dma.done.wait [#allocation3], 128  }
 0x292   :  { %470 = vsyncadd [#allocation3], 4294967168 }
 0x293   :  { %388 = vsyncpa [#allocation3], 1 }

</bundles_post_ra>
